<compile_context>
chip_gen: v6e
topology: v6e:2x2x1
jax: 0.10.0
libtpu: 0.0.40
codegen_flags: <defaults>
</compile_context>

<pallas_src>
import functools

import numpy as np
import jax
import jax.numpy as jnp
from jax.experimental import pallas as pl
from jax.experimental.pallas import tpu as pltpu

LEAKY_SLOPE = 0.2
BN_EPS = 0.8          # eps of BatchNorm1d(n, 0.8)
LAST_TILE = 1024      # max output-column tile for the final (dominant) layer


def _round_up(x, m):
    return ((x + m - 1) // m) * m


def _out_tiling(img_shape):
    out_dim = int(np.prod(img_shape))
    out_pad = _round_up(out_dim, 128)          # lane-dense output writeback
    if out_pad > LAST_TILE:
        out_pad = _round_up(out_pad, LAST_TILE)
        tile_n = LAST_TILE
    else:
        tile_n = out_pad
    return out_dim, out_pad, tile_n


def _leaky_relu(x):
    return jnp.where(x > 0, x, LEAKY_SLOPE * x)


def _bn_lrelu(x, gamma, beta):
    # Training-mode BatchNorm1d (batch mean, biased variance, eps=0.8) fused with
    # the following LeakyReLU.  xc is materialized once; affine folded into scale.
    mean = jnp.mean(x, axis=0, keepdims=True)
    xc = x - mean
    var = jnp.mean(xc * xc, axis=0, keepdims=True)
    scale = gamma * jax.lax.rsqrt(var + BN_EPS)
    return _leaky_relu(xc * scale + beta)


def generator_kernel(z_ref, lbias_ref,
                     w1_ref,
                     w2_ref, g2_ref, be2_ref,
                     w3_ref, g3_ref, be3_ref,
                     w4_ref, b4_ref,
                     out_ref):
    # Layers 1-3 are tiny relative to layer 4; recompute them every grid step so
    # the output-column grid axis is fully 'parallel' (v7x megacore shardable).
    z = z_ref[...].astype(jnp.bfloat16)

    # Linear(latent -> 128); label-embedding contribution + b1 folded into lbias.
    h = jnp.dot(z, w1_ref[...], preferred_element_type=jnp.float32) + lbias_ref[...]
    h = _leaky_relu(h)

    # Linear(128 -> 256): bias omitted (exactly cancelled by training-mode BN).
    h = jnp.dot(h.astype(jnp.bfloat16), w2_ref[...],
                preferred_element_type=jnp.float32)
    h = _bn_lrelu(h, g2_ref[...], be2_ref[...])

    # Linear(256 -> 512): bias likewise omitted.
    h = jnp.dot(h.astype(jnp.bfloat16), w3_ref[...],
                preferred_element_type=jnp.float32)
    h = _bn_lrelu(h, g3_ref[...], be3_ref[...])

    # Linear(512 -> tile of padded out_dim) + Tanh; w4/b4/out tiled over columns.
    h = jnp.dot(h.astype(jnp.bfloat16), w4_ref[...],
                preferred_element_type=jnp.float32) + b4_ref[...]
    out_ref[...] = jnp.tanh(h)


def init_generator_params(key, latent_dim, num_classes, img_shape):
    """Deterministic init. Linear weights stored as (in, out); MXU weights in bf16."""
    out_dim, out_pad, _ = _out_tiling(img_shape)
    keys = jax.random.split(key, 10)

    def lin(kw, kb, din, dout):
        bound = 1.0 / float(np.sqrt(din))
        w = jax.random.uniform(kw, (din, dout), minval=-bound, maxval=bound,
                               dtype=jnp.float32)
        b = jax.random.uniform(kb, (1, dout), minval=-bound, maxval=bound,
                               dtype=jnp.float32)
        return w, b

    params = {}
    # Embedding(num_classes, num_classes)
    params["emb"] = jax.random.normal(keys[0], (num_classes, num_classes),
                                      dtype=jnp.float32)

    # Linear(latent+nc -> 128), split into a z-part and an embedding-part.
    bound1 = 1.0 / float(np.sqrt(latent_dim + num_classes))
    params["w1_z"] = jax.random.uniform(keys[1], (latent_dim, 128),
                                        minval=-bound1, maxval=bound1,
                                        dtype=jnp.float32).astype(jnp.bfloat16)
    params["w1_emb"] = jax.random.uniform(keys[2], (num_classes, 128),
                                          minval=-bound1, maxval=bound1,
                                          dtype=jnp.float32)
    params["b1"] = jax.random.uniform(keys[3], (1, 128),
                                      minval=-bound1, maxval=bound1,
                                      dtype=jnp.float32)

    # Linear(128 -> 256) / (256 -> 512): biases not created (cancelled by BN).
    w2, _ = lin(keys[4], keys[4], 128, 256)
    w3, _ = lin(keys[5], keys[5], 256, 512)
    params["w2"] = w2.astype(jnp.bfloat16)
    params["w3"] = w3.astype(jnp.bfloat16)

    # Linear(512 -> out_dim) + Tanh, zero-padded to a lane-dense out_pad.
    w4, b4 = lin(keys[6], keys[7], 512, out_dim)
    params["w4"] = jnp.pad(w4, ((0, 0), (0, out_pad - out_dim))).astype(jnp.bfloat16)
    params["b4"] = jnp.pad(b4, ((0, 0), (0, out_pad - out_dim)))

    # BatchNorm affine params (PyTorch init: gamma=1, beta=0).
    params["g2"] = jnp.ones((1, 256), jnp.float32)
    params["be2"] = jnp.zeros((1, 256), jnp.float32)
    params["g3"] = jnp.ones((1, 512), jnp.float32)
    params["be3"] = jnp.zeros((1, 512), jnp.float32)
    return params


@functools.partial(jax.jit, static_argnames=("img_shape",))
def generator_forward(params, z, labels, img_shape):
    B, latent_dim = z.shape
    out_dim, out_pad, tile_n = _out_tiling(img_shape)
    grid_n = out_pad // tile_n

    # Glue: fold embedding lookup + concat + layer-1 bias into one (B, 128)
    # additive term:  lbias = emb[labels] @ w1_emb + b1   (f32, tiny).
    table = jnp.dot(params["emb"], params["w1_emb"]) + params["b1"]   # (nc, 128)
    lbias = jnp.take(table, labels, axis=0)                           # (B, 128)

    def resident(shape):
        # Whole small array kept VMEM-resident across the column grid.
        return pl.BlockSpec(shape, lambda j: (0, 0))

    flat = pl.pallas_call(
        generator_kernel,
        out_shape=jax.ShapeDtypeStruct((B, out_pad), jnp.float32),
        grid=(grid_n,),
        in_specs=[
            resident((B, latent_dim)),        # z
            resident((B, 128)),               # lbias
            resident((latent_dim, 128)),      # w1_z
            resident((128, 256)),             # w2
            resident((1, 256)),               # g2
            resident((1, 256)),               # be2
            resident((256, 512)),             # w3
            resident((1, 512)),               # g3
            resident((1, 512)),               # be3
            pl.BlockSpec((512, tile_n), lambda j: (0, j)),   # w4 column tiles
            pl.BlockSpec((1, tile_n), lambda j: (0, j)),     # b4 column tiles
        ],
        out_specs=pl.BlockSpec((B, tile_n), lambda j: (0, j)),
        compiler_params=pltpu.CompilerParams(
            dimension_semantics=("parallel",)),
    )(z, lbias, params["w1_z"], params["w2"], params["g2"], params["be2"],
      params["w3"], params["g3"], params["be3"], params["w4"], params["b4"])

    return flat[:, :out_dim].reshape((B,) + tuple(img_shape))


if __name__ == "__main__":
    latent_dim = 32
    num_classes = 4
    img_shape = (1, 16, 16)   # C, H, W  -> prod = 256
    batch = 8

    key = jax.random.PRNGKey(0)
    kp, kz, kl = jax.random.split(key, 3)

    params = init_generator_params(kp, latent_dim, num_classes, img_shape)
    z = jax.random.normal(kz, (batch, latent_dim), dtype=jnp.float32)
    labels = jax.random.randint(kl, (batch,), 0, num_classes, dtype=jnp.int32)

    img = generator_forward(params, z, labels, img_shape)
    jax.block_until_ready(img)

    assert img.shape == (batch,) + img_shape
    assert bool(jnp.all(jnp.isfinite(img)))
    assert bool(jnp.all(jnp.abs(img) <= 1.0))   # tanh range
    print("KERNEL_OK")
</pallas_src>

<mosaic_0001>
module attributes {stable_mosaic.version = 11 : i64} {
  func.func @generator_kernel(%arg0: i32, %arg1: memref<8x32xf32, #tpu.memory_space<vmem>>, %arg2: memref<8x128xf32, #tpu.memory_space<vmem>>, %arg3: memref<32x128xbf16, #tpu.memory_space<vmem>>, %arg4: memref<128x256xbf16, #tpu.memory_space<vmem>>, %arg5: memref<1x256xf32, #tpu.memory_space<vmem>>, %arg6: memref<1x256xf32, #tpu.memory_space<vmem>>, %arg7: memref<256x512xbf16, #tpu.memory_space<vmem>>, %arg8: memref<1x512xf32, #tpu.memory_space<vmem>>, %arg9: memref<1x512xf32, #tpu.memory_space<vmem>>, %arg10: memref<512x256xbf16, #tpu.memory_space<vmem>>, %arg11: memref<1x256xf32, #tpu.memory_space<vmem>>, %arg12: memref<8x256xf32, #tpu.memory_space<vmem>>) attributes {dimension_semantics = [#tpu.dimension_semantics<parallel>], iteration_bounds = array<i64: 1>, scalar_prefetch = 0 : i64, scratch_operands = 0 : i64, tpu.core_type = #tpu.core_type<tc>, window_params = [{pipeline_mode = #tpu.pipeline_mode<synchronous>, transform_indices = @transform_0, window_bounds = array<i64: 8, 32>}, {pipeline_mode = #tpu.pipeline_mode<synchronous>, transform_indices = @transform_1, window_bounds = array<i64: 8, 128>}, {pipeline_mode = #tpu.pipeline_mode<synchronous>, transform_indices = @transform_2, window_bounds = array<i64: 32, 128>}, {pipeline_mode = #tpu.pipeline_mode<synchronous>, transform_indices = @transform_3, window_bounds = array<i64: 128, 256>}, {pipeline_mode = #tpu.pipeline_mode<synchronous>, transform_indices = @transform_4, window_bounds = array<i64: 1, 256>}, {pipeline_mode = #tpu.pipeline_mode<synchronous>, transform_indices = @transform_5, window_bounds = array<i64: 1, 256>}, {pipeline_mode = #tpu.pipeline_mode<synchronous>, transform_indices = @transform_6, window_bounds = array<i64: 256, 512>}, {pipeline_mode = #tpu.pipeline_mode<synchronous>, transform_indices = @transform_7, window_bounds = array<i64: 1, 512>}, {pipeline_mode = #tpu.pipeline_mode<synchronous>, transform_indices = @transform_8, window_bounds = array<i64: 1, 512>}, {transform_indices = @transform_9, window_bounds = array<i64: 512, 256>}, {transform_indices = @transform_10, window_bounds = array<i64: 1, 256>}, {transform_indices = @transform_11, window_bounds = array<i64: 8, 256>}]} {
    %c0 = arith.constant 0 : index
    %c0_0 = arith.constant 0 : index
    %0 = vector.load %arg1[%c0, %c0_0] : memref<8x32xf32, #tpu.memory_space<vmem>>, vector<8x32xf32>
    %1 = arith.truncf %0 : vector<8x32xf32> to vector<8x32xbf16>
    %c0_1 = arith.constant 0 : index
    %c0_2 = arith.constant 0 : index
    %2 = vector.load %arg3[%c0_1, %c0_2] : memref<32x128xbf16, #tpu.memory_space<vmem>>, vector<32x128xbf16>
    %cst = arith.constant dense<0.000000e+00> : vector<8x128xf32>
    %3 = tpu.matmul %1, %2, %cst {dimension_numbers = #tpu.dot_dimension_numbers<[1], [0], [0], [1], [0, 0, 1, 1], [], []>} : vector<8x32xbf16>, vector<32x128xbf16>, vector<8x128xf32> -> vector<8x128xf32>
    %c0_3 = arith.constant 0 : index
    %c0_4 = arith.constant 0 : index
    %4 = vector.load %arg2[%c0_3, %c0_4] : memref<8x128xf32, #tpu.memory_space<vmem>>, vector<8x128xf32>
    %5 = arith.addf %3, %4 : vector<8x128xf32>
    %cst_5 = arith.constant 0.000000e+00 : f32
    %6 = vector.broadcast %cst_5 : f32 to vector<8x128xf32>
    %7 = arith.cmpf ogt, %5, %6 : vector<8x128xf32>
    %cst_6 = arith.constant 2.000000e-01 : f32
    %8 = vector.broadcast %cst_6 : f32 to vector<8x128xf32>
    %9 = arith.mulf %8, %5 : vector<8x128xf32>
    %10 = arith.select %7, %5, %9 : vector<8x128xi1>, vector<8x128xf32>
    %11 = arith.truncf %10 : vector<8x128xf32> to vector<8x128xbf16>
    %c0_7 = arith.constant 0 : index
    %c0_8 = arith.constant 0 : index
    %12 = vector.load %arg4[%c0_7, %c0_8] : memref<128x256xbf16, #tpu.memory_space<vmem>>, vector<128x256xbf16>
    %cst_9 = arith.constant dense<0.000000e+00> : vector<8x256xf32>
    %13 = tpu.matmul %11, %12, %cst_9 {dimension_numbers = #tpu.dot_dimension_numbers<[1], [0], [0], [1], [0, 0, 1, 1], [], []>} : vector<8x128xbf16>, vector<128x256xbf16>, vector<8x256xf32> -> vector<8x256xf32>
    %c0_10 = arith.constant 0 : index
    %c0_11 = arith.constant 0 : index
    %14 = vector.load %arg5[%c0_10, %c0_11] : memref<1x256xf32, #tpu.memory_space<vmem>>, vector<1x256xf32>
    %c0_12 = arith.constant 0 : index
    %c0_13 = arith.constant 0 : index
    %15 = vector.load %arg6[%c0_12, %c0_13] : memref<1x256xf32, #tpu.memory_space<vmem>>, vector<1x256xf32>
    %cst_14 = arith.constant dense<0.000000e+00> : vector<256xf32>
    %16 = vector.multi_reduction <add>, %13, %cst_14 [0] : vector<8x256xf32> to vector<256xf32>
    %17 = vector.shape_cast %16 : vector<256xf32> to vector<1x256xf32>
    %cst_15 = arith.constant 8.000000e+00 : f32
    %18 = vector.broadcast %cst_15 : f32 to vector<1x256xf32>
    %19 = arith.divf %17, %18 : vector<1x256xf32>
    %20 = vector.broadcast %19 : vector<1x256xf32> to vector<8x256xf32>
    %21 = arith.subf %13, %20 : vector<8x256xf32>
    %22 = arith.mulf %21, %21 : vector<8x256xf32>
    %cst_16 = arith.constant dense<0.000000e+00> : vector<256xf32>
    %23 = vector.multi_reduction <add>, %22, %cst_16 [0] : vector<8x256xf32> to vector<256xf32>
    %24 = vector.shape_cast %23 : vector<256xf32> to vector<1x256xf32>
    %cst_17 = arith.constant 8.000000e+00 : f32
    %25 = vector.broadcast %cst_17 : f32 to vector<1x256xf32>
    %26 = arith.divf %24, %25 : vector<1x256xf32>
    %cst_18 = arith.constant 8.000000e-01 : f32
    %27 = vector.broadcast %cst_18 : f32 to vector<1x256xf32>
    %28 = arith.addf %26, %27 : vector<1x256xf32>
    %29 = math.rsqrt %28 : vector<1x256xf32>
    %30 = arith.mulf %14, %29 : vector<1x256xf32>
    %31 = vector.broadcast %30 : vector<1x256xf32> to vector<8x256xf32>
    %32 = arith.mulf %21, %31 : vector<8x256xf32>
    %33 = vector.broadcast %15 : vector<1x256xf32> to vector<8x256xf32>
    %34 = arith.addf %32, %33 : vector<8x256xf32>
    %cst_19 = arith.constant 0.000000e+00 : f32
    %35 = vector.broadcast %cst_19 : f32 to vector<8x256xf32>
    %36 = arith.cmpf ogt, %34, %35 : vector<8x256xf32>
    %cst_20 = arith.constant 2.000000e-01 : f32
    %37 = vector.broadcast %cst_20 : f32 to vector<8x256xf32>
    %38 = arith.mulf %37, %34 : vector<8x256xf32>
    %39 = arith.select %36, %34, %38 : vector<8x256xi1>, vector<8x256xf32>
    %40 = arith.truncf %39 : vector<8x256xf32> to vector<8x256xbf16>
    %c0_21 = arith.constant 0 : index
    %c0_22 = arith.constant 0 : index
    %41 = vector.load %arg7[%c0_21, %c0_22] : memref<256x512xbf16, #tpu.memory_space<vmem>>, vector<256x512xbf16>
    %cst_23 = arith.constant dense<0.000000e+00> : vector<8x512xf32>
    %42 = tpu.matmul %40, %41, %cst_23 {dimension_numbers = #tpu.dot_dimension_numbers<[1], [0], [0], [1], [0, 0, 1, 1], [], []>} : vector<8x256xbf16>, vector<256x512xbf16>, vector<8x512xf32> -> vector<8x512xf32>
    %c0_24 = arith.constant 0 : index
    %c0_25 = arith.constant 0 : index
    %43 = vector.load %arg8[%c0_24, %c0_25] : memref<1x512xf32, #tpu.memory_space<vmem>>, vector<1x512xf32>
    %c0_26 = arith.constant 0 : index
    %c0_27 = arith.constant 0 : index
    %44 = vector.load %arg9[%c0_26, %c0_27] : memref<1x512xf32, #tpu.memory_space<vmem>>, vector<1x512xf32>
    %cst_28 = arith.constant dense<0.000000e+00> : vector<512xf32>
    %45 = vector.multi_reduction <add>, %42, %cst_28 [0] : vector<8x512xf32> to vector<512xf32>
    %46 = vector.shape_cast %45 : vector<512xf32> to vector<1x512xf32>
    %cst_29 = arith.constant 8.000000e+00 : f32
    %47 = vector.broadcast %cst_29 : f32 to vector<1x512xf32>
    %48 = arith.divf %46, %47 : vector<1x512xf32>
    %49 = vector.broadcast %48 : vector<1x512xf32> to vector<8x512xf32>
    %50 = arith.subf %42, %49 : vector<8x512xf32>
    %51 = arith.mulf %50, %50 : vector<8x512xf32>
    %cst_30 = arith.constant dense<0.000000e+00> : vector<512xf32>
    %52 = vector.multi_reduction <add>, %51, %cst_30 [0] : vector<8x512xf32> to vector<512xf32>
    %53 = vector.shape_cast %52 : vector<512xf32> to vector<1x512xf32>
    %cst_31 = arith.constant 8.000000e+00 : f32
    %54 = vector.broadcast %cst_31 : f32 to vector<1x512xf32>
    %55 = arith.divf %53, %54 : vector<1x512xf32>
    %cst_32 = arith.constant 8.000000e-01 : f32
    %56 = vector.broadcast %cst_32 : f32 to vector<1x512xf32>
    %57 = arith.addf %55, %56 : vector<1x512xf32>
    %58 = math.rsqrt %57 : vector<1x512xf32>
    %59 = arith.mulf %43, %58 : vector<1x512xf32>
    %60 = vector.broadcast %59 : vector<1x512xf32> to vector<8x512xf32>
    %61 = arith.mulf %50, %60 : vector<8x512xf32>
    %62 = vector.broadcast %44 : vector<1x512xf32> to vector<8x512xf32>
    %63 = arith.addf %61, %62 : vector<8x512xf32>
    %cst_33 = arith.constant 0.000000e+00 : f32
    %64 = vector.broadcast %cst_33 : f32 to vector<8x512xf32>
    %65 = arith.cmpf ogt, %63, %64 : vector<8x512xf32>
    %cst_34 = arith.constant 2.000000e-01 : f32
    %66 = vector.broadcast %cst_34 : f32 to vector<8x512xf32>
    %67 = arith.mulf %66, %63 : vector<8x512xf32>
    %68 = arith.select %65, %63, %67 : vector<8x512xi1>, vector<8x512xf32>
    %69 = arith.truncf %68 : vector<8x512xf32> to vector<8x512xbf16>
    %c0_35 = arith.constant 0 : index
    %c0_36 = arith.constant 0 : index
    %70 = vector.load %arg10[%c0_35, %c0_36] : memref<512x256xbf16, #tpu.memory_space<vmem>>, vector<512x256xbf16>
    %cst_37 = arith.constant dense<0.000000e+00> : vector<8x256xf32>
    %71 = tpu.matmul %69, %70, %cst_37 {dimension_numbers = #tpu.dot_dimension_numbers<[1], [0], [0], [1], [0, 0, 1, 1], [], []>} : vector<8x512xbf16>, vector<512x256xbf16>, vector<8x256xf32> -> vector<8x256xf32>
    %c0_38 = arith.constant 0 : index
    %c0_39 = arith.constant 0 : index
    %72 = vector.load %arg11[%c0_38, %c0_39] : memref<1x256xf32, #tpu.memory_space<vmem>>, vector<1x256xf32>
    %73 = vector.broadcast %72 : vector<1x256xf32> to vector<8x256xf32>
    %74 = arith.addf %71, %73 : vector<8x256xf32>
    %75 = math.tanh %74 : vector<8x256xf32>
    %c0_40 = arith.constant 0 : index
    %c0_41 = arith.constant 0 : index
    %76 = vector.load %arg12[%c0_40, %c0_41] : memref<8x256xf32, #tpu.memory_space<vmem>>, vector<8x256xf32>
    tpu.vector_store %arg12[%c0_40, %c0_41], %75 {strides = array<i32>} : memref<8x256xf32, #tpu.memory_space<vmem>>, vector<8x256xf32>,
    return
  }
  func.func @transform_0(%arg0: i32) -> (i32, i32) {
    %c0_i32 = arith.constant 0 : i32
    %c0_i32_0 = arith.constant 0 : i32
    %c0_i32_1 = arith.constant 0 : i32
    return %c0_i32, %c0_i32_0 : i32, i32
  }
  func.func @transform_1(%arg0: i32) -> (i32, i32) {
    %c0_i32 = arith.constant 0 : i32
    %c0_i32_0 = arith.constant 0 : i32
    %c0_i32_1 = arith.constant 0 : i32
    return %c0_i32, %c0_i32_0 : i32, i32
  }
  func.func @transform_2(%arg0: i32) -> (i32, i32) {
    %c0_i32 = arith.constant 0 : i32
    %c0_i32_0 = arith.constant 0 : i32
    %c0_i32_1 = arith.constant 0 : i32
    return %c0_i32, %c0_i32_0 : i32, i32
  }
  func.func @transform_3(%arg0: i32) -> (i32, i32) {
    %c0_i32 = arith.constant 0 : i32
    %c0_i32_0 = arith.constant 0 : i32
    %c0_i32_1 = arith.constant 0 : i32
    return %c0_i32, %c0_i32_0 : i32, i32
  }
  func.func @transform_4(%arg0: i32) -> (i32, i32) {
    %c0_i32 = arith.constant 0 : i32
    %c0_i32_0 = arith.constant 0 : i32
    %c0_i32_1 = arith.constant 0 : i32
    return %c0_i32, %c0_i32_0 : i32, i32
  }
  func.func @transform_5(%arg0: i32) -> (i32, i32) {
    %c0_i32 = arith.constant 0 : i32
    %c0_i32_0 = arith.constant 0 : i32
    %c0_i32_1 = arith.constant 0 : i32
    return %c0_i32, %c0_i32_0 : i32, i32
  }
  func.func @transform_6(%arg0: i32) -> (i32, i32) {
    %c0_i32 = arith.constant 0 : i32
    %c0_i32_0 = arith.constant 0 : i32
    %c0_i32_1 = arith.constant 0 : i32
    return %c0_i32, %c0_i32_0 : i32, i32
  }
  func.func @transform_7(%arg0: i32) -> (i32, i32) {
    %c0_i32 = arith.constant 0 : i32
    %c0_i32_0 = arith.constant 0 : i32
    %c0_i32_1 = arith.constant 0 : i32
    return %c0_i32, %c0_i32_0 : i32, i32
  }
  func.func @transform_8(%arg0: i32) -> (i32, i32) {
    %c0_i32 = arith.constant 0 : i32
    %c0_i32_0 = arith.constant 0 : i32
    %c0_i32_1 = arith.constant 0 : i32
    return %c0_i32, %c0_i32_0 : i32, i32
  }
  func.func @transform_9(%arg0: i32) -> (i32, i32) {
    %c0_i32 = arith.constant 0 : i32
    %c0_i32_0 = arith.constant 0 : i32
    return %c0_i32, %arg0 : i32, i32
  }
  func.func @transform_10(%arg0: i32) -> (i32, i32) {
    %c0_i32 = arith.constant 0 : i32
    %c0_i32_0 = arith.constant 0 : i32
    return %c0_i32, %arg0 : i32, i32
  }
  func.func @transform_11(%arg0: i32) -> (i32, i32) {
    %c0_i32 = arith.constant 0 : i32
    %c0_i32_0 = arith.constant 0 : i32
    return %c0_i32, %arg0 : i32, i32
  }
}

</mosaic_0001>

<bundles_post_ra>
// kernel: generator_forward.1
= control target key start
LH: loop header
LB: loop body
LE: loop exit
PB: predicated region body
PF: predicated region fallthrough
CT: control target
= control target key end

     0   :  { %16 = vsyncpa [#allocation3], 0  ;;  %s2346_s0 = inlined_call_operand.vmem [shape: f32[8,32], index: 0, kind: input, shape index: {}]   ;;  %s2347_s1 = inlined_call_operand.vmem [shape: f32[8,128], index: 1, kind: input, shape index: {}]   ;;  %s2348_s2 = inlined_call_operand.hbm [shape: bf16[32,128], index: 2, kind: input, shape index: {}]   ;;  %s2349_s3 = inlined_call_operand.vmem [shape: bf16[128,256], index: 3, kind: input, shape index: {}]   ;;  %s2350_s4 = inlined_call_operand.hbm [shape: f32[1,256], index: 4, kind: input, shape index: {}]   ;;  %s2351_s5 = inlined_call_operand.hbm [shape: f32[1,256], index: 5, kind: input, shape index: {}]   ;;  %s2352_s6 = inlined_call_operand.hbm [shape: bf16[256,512], index: 6, kind: input, shape index: {}]   ;;  %s2353_s7 = inlined_call_operand.hbm [shape: f32[1,512], index: 7, kind: input, shape index: {}]   ;;  %s2354_s8 = inlined_call_operand.hbm [shape: f32[1,512], index: 8, kind: input, shape index: {}]   ;;  %s2355_s9 = inlined_call_operand.hbm [shape: bf16[512,256], index: 9, kind: input, shape index: {}]   ;;  %s2356_s10 = inlined_call_operand.hbm [shape: f32[1,256], index: 10, kind: input, shape index: {}]   ;;  %s2357_s11 = inlined_call_operand.vmem [shape: f32[8,256], index: 11, kind: output, shape index: {}]  }
   0x1   :  { %17 = vsyncpa [#allocation5], 0 }
   0x2   :  { %18 = vsyncpa [#allocation8], 0 }
   0x3   :  { %19 = vsyncpa [#allocation11], 0 }
   0x4   :  { %20 = vsyncpa [#allocation14], 0  ;;  %s2141_s17 = smov [#allocation4]   ;;  %s2142_s19 = smov [#allocation7]  }
   0x5   :  { %s45_s18 = sshll.u32 %s2141_s17, 4  ;;  %s64_s20 = sshll.u32 %s2142_s19, 4  ;;  %s46_s18 = int_to_ptr.vmem [resolvable:$true] %s45_s18  ;;  %s65_s20 = int_to_ptr.vmem [resolvable:$true] %s64_s20 }
   0x6   :  { %s1979_s21 = scalar_lea.vmem %s46_s18, 32  ;;  %p1984_p1 = scmp.lt.s32.totalorder %s46_s18, %s46_s18 }
   0x7   :  { %p1980_p0 = scmp.ne.s32.totalorder %s46_s18, %s1979_s21  ;;  %p1985_p2 = scmp.lt.s32.totalorder %s1979_s21, %s1979_s21 }
   0x9   :  { %p1986_p3 = por %p1985_p2, %p1984_p1 }
   0xb   :  { %p1987_p4 = pnand %p1986_p3, %p1980_p0 }
   0xd   :  { %1990 = shalt.err (!%p1987_p4)
}
   0xe   :  { %48 = dma.hbm_to_vmem [thread:$0]  %s2350_s4, 32, %s46_s18, [#allocation5]  }
   0xf   :  { %s1999_s24 = scalar_lea.vmem %s65_s20, 8192  ;;  %p2004_p6 = scmp.lt.s32.totalorder %s65_s20, %s65_s20 }
  0x10   :  { %p2000_p5 = scmp.ne.s32.totalorder %s65_s20, %s1999_s24  ;;  %p2005_p7 = scmp.lt.s32.totalorder %s1999_s24, %s1999_s24 }
  0x12   :  { %p2006_p8 = por %p2005_p7, %p2004_p6 }
  0x14   :  { %p2007_p9 = pnand %p2006_p8, %p2000_p5 }
  0x16   :  { %2010 = shalt.err (!%p2007_p9)
}
  0x17   :  { %s2143_s25 = smov 256   ;;  %s2144_s26 = smov 16  }
  0x18   :  { %70 = dma.hbm_to_vmem [thread:$0]  %s2352_s6, 8192, %s65_s20, [#allocation8], %s2143_s25, %s2143_s25, %s2144_s26  }
  0x19   :  { %s2145_s29 = smov [#allocation10]   ;;  %s2146_s12 = smov [#allocation2]  }
  0x1a   :  { %s87_s30 = sshll.u32 %s2145_s29, 4  ;;  %s30_s13 = sshll.u32 %s2146_s12, 4  ;;  %s88_s30 = int_to_ptr.vmem [resolvable:$true] %s87_s30  ;;  %s31_s13 = int_to_ptr.vmem [resolvable:$true] %s30_s13 }
  0x1b   :  { %s2019_s4 = scalar_lea.vmem %s88_s30, 64  ;;  %p2024_p11 = scmp.lt.s32.totalorder %s88_s30, %s88_s30 }
  0x1c   :  { %p2020_p10 = scmp.ne.s32.totalorder %s88_s30, %s2019_s4  ;;  %p2025_p12 = scmp.lt.s32.totalorder %s2019_s4, %s2019_s4 }
  0x1e   :  { %p2026_p13 = por %p2025_p12, %p2024_p11 }
  0x20   :  { %p2027_p0 = pnand %p2026_p13, %p2020_p10 }
  0x22   :  { %2030 = shalt.err (!%p2027_p0)
}
  0x23   :  { %90 = dma.hbm_to_vmem [thread:$0]  %s2354_s8, 64, %s88_s30, [#allocation11]  }
  0x24   :  { %s2039_s16 = scalar_lea.vmem %s31_s13, 256  ;;  %p2044_p2 = scmp.lt.s32.totalorder %s31_s13, %s31_s13 }
  0x25   :  { %p2040_p1 = scmp.ne.s32.totalorder %s31_s13, %s2039_s16  ;;  %p2045_p3 = scmp.lt.s32.totalorder %s2039_s16, %s2039_s16 }
  0x27   :  { %p2046_p4 = por %p2045_p3, %p2044_p2 }
  0x29   :  { %p2047_p5 = pnand %p2046_p4, %p2040_p1 }
  0x2b   :  { %2050 = shalt.err (!%p2047_p5)
}
  0x2c   :  { %s2147_s6 = smov 64   ;;  %s2148_s17 = smov 4  }
  0x2d   :  { %36 = dma.hbm_to_vmem [thread:$0]  %s2348_s2, 256, %s31_s13, [#allocation3], %s2147_s6, %s2147_s6, %s2148_s17  }
  0x2e   :  { %s2149_s20 = smov [#allocation6]   ;;  %s2150_s22 = smov [#allocation9]  }
  0x2f   :  { %s55_s21 = sshll.u32 %s2149_s20, 4  ;;  %s77_s23 = sshll.u32 %s2150_s22, 4  ;;  %s56_s21 = int_to_ptr.vmem [resolvable:$true] %s55_s21  ;;  %s78_s23 = int_to_ptr.vmem [resolvable:$true] %s77_s23 }
  0x30   :  { %s2059_s8 = scalar_lea.vmem %s56_s21, 32  ;;  %p2064_p7 = scmp.lt.s32.totalorder %s56_s21, %s56_s21 }
  0x31   :  { %p2060_p6 = scmp.ne.s32.totalorder %s56_s21, %s2059_s8  ;;  %p2065_p8 = scmp.lt.s32.totalorder %s2059_s8, %s2059_s8 }
  0x33   :  { %p2066_p9 = por %p2065_p8, %p2064_p7 }
  0x35   :  { %p2067_p10 = pnand %p2066_p9, %p2060_p6 }
  0x37   :  { %2070 = shalt.err (!%p2067_p10)
}
  0x38   :  { %58 = dma.hbm_to_vmem [thread:$0]  %s2351_s5, 32, %s56_s21, [#allocation5]  }
  0x39   :  { %s2079_s26 = scalar_lea.vmem %s78_s23, 64  ;;  %p2084_p12 = scmp.lt.s32.totalorder %s78_s23, %s78_s23 }
  0x3a   :  { %p2080_p11 = scmp.ne.s32.totalorder %s78_s23, %s2079_s26  ;;  %p2085_p13 = scmp.lt.s32.totalorder %s2079_s26, %s2079_s26 }
  0x3c   :  { %p2086_p0 = por %p2085_p13, %p2084_p12 }
  0x3e   :  { %p2087_p1 = pnand %p2086_p0, %p2080_p11 }
  0x40   :  { %2090 = shalt.err (!%p2087_p1)
}
  0x41   :  { %80 = dma.hbm_to_vmem [thread:$0]  %s2353_s7, 64, %s78_s23, [#allocation8]  }
  0x42   :  { %s2151_s28 = smov [#allocation12]  }
  0x43   :  { %s96_s29 = sshll.u32 %s2151_s28, 4  ;;  %s97_s29 = int_to_ptr.vmem [resolvable:$true] %s96_s29 }
  0x44   :  { %s2099_s30 = scalar_lea.vmem %s97_s29, 8192  ;;  %p2104_p3 = scmp.lt.s32.totalorder %s97_s29, %s97_s29 }
  0x45   :  { %p2100_p2 = scmp.ne.s32.totalorder %s97_s29, %s2099_s30  ;;  %p2105_p4 = scmp.lt.s32.totalorder %s2099_s30, %s2099_s30 }
  0x47   :  { %p2106_p5 = por %p2105_p4, %p2104_p3 }
  0x49   :  { %p2107_p6 = pnand %p2106_p5, %p2100_p2 }
  0x4b   :  { %2110 = shalt.err (!%p2107_p6)
}
  0x4c   :  { %s2152_s5 = smov 128   ;;  %s2153_s12 = smov 8  }
  0x4d   :  { %102 = dma.hbm_to_vmem [thread:$0]  %s2355_s9, 8192, %s97_s29, [#allocation11], %s2152_s5, %s2152_s5, %s2153_s12  }
  0x4e   :  { %s2154_s14 = smov [#allocation13]  }
  0x4f   :  { %s109_s15 = sshll.u32 %s2154_s14, 4  ;;  %s110_s15 = int_to_ptr.vmem [resolvable:$true] %s109_s15 }
  0x50   :  { %s2119_s7 = scalar_lea.vmem %s110_s15, 32  ;;  %p2124_p8 = scmp.lt.s32.totalorder %s110_s15, %s110_s15 }
  0x51   :  { %p2120_p7 = scmp.ne.s32.totalorder %s110_s15, %s2119_s7  ;;  %p2125_p9 = scmp.lt.s32.totalorder %s2119_s7, %s2119_s7 }
  0x53   :  { %p2126_p10 = por %p2125_p9, %p2124_p8 }
  0x55   :  { %p2127_p11 = pnand %p2126_p10, %p2120_p7 }
  0x57   :  { %2130 = shalt.err (!%p2127_p11)
}
  0x58   :  { %112 = dma.hbm_to_vmem [thread:$0]  %s2356_s10, 32, %s110_s15, [#allocation14]  }
  0x59   :  { %2131 = dma.done.wait [#allocation3], 256  }
  0x5a   :  { %2132 = vsyncadd [#allocation3], 4294967040 }
  0x5b   :  { %2133 = dma.done.wait [#allocation5], 64  }
  0x5c   :  { %2134 = vsyncadd [#allocation5], 4294967232 }
  0x5d   :  { %2135 = dma.done.wait [#allocation8], 8256  }
  0x5e   :  { %2136 = vsyncadd [#allocation8], 4294959040 }
  0x5f   :  { %2137 = dma.done.wait [#allocation11], 8256  }
  0x60   :  { %2138 = vsyncadd [#allocation11], 4294959040 }
  0x61   :  { %2139 = dma.done.wait [#allocation14], 32  }
  0x62   :  { %2140 = vsyncadd [#allocation14], 4294967264  ;;  %v2155_v0 = vmov 0.0   ;;  %vm2156_vm0 = vmmov 0   ;;  %v1737_v1 = vld [vmem:[#allocation2 + $0x8] sm:$0xff]   ;;  %v1738_v2 = vld [vmem:[#allocation2] sm:$0xff]  }
  0x63   :  { %1711 = vmatprep.subr.bf16.mxu0 %v2155_v0  ;;  %1715 = vmatprep.mubr.msk.bf16.mxu0 %vm2156_vm0, %v2155_v0  ;;  %v138_v3 = vld [vmem:[%s2346_s0] sm:$0xff]  ;;  %v1739_v4 = vld [vmem:[%s2349_s3 + $0x74] ss:$8 sps:$4 sm:$0xff]   ;;  %v1741_v5 = vld [vmem:[%s2349_s3 + $0x70] ss:$8 sps:$4 sm:$0xff]   ;;  %vm157_vm1 = vcmask 261120  }
  0x64   :  { %1712 = vmatpush3.bf16.msra.mxu0 %v1737_v1  ;;  %v1742_v6 = vld [vmem:[%s2349_s3 + $0x64] ss:$8 sps:$4 sm:$0xff]   ;;  %v139_v7 = vpack.c.bf16 %v138_v3, %v138_v3  ;;  %301 = vmatprep.subr.bf16.mxu1 %v1739_v4  ;;  %v1744_v8 = vld [vmem:[%s2349_s3 + $0x60] ss:$8 sps:$4 sm:$0xff]   ;;  %v1745_v9 = vld [vmem:[%s2349_s3 + $0x54] ss:$8 sps:$4 sm:$0xff]  }
  0x65   :  { %1713 = vmatprep.subr.bf16.mxu0 %v2155_v0  ;;  %302 = vmatpush1.bf16.msra.mxu1 %v1741_v5  ;;  %v1747_v10 = vld [vmem:[%s2349_s3 + $0x50] ss:$8 sps:$4 sm:$0xff]   ;;  %v1748_v11 = vld [vmem:[%s2349_s3 + $0x44] ss:$8 sps:$4 sm:$0xff]   ;;  %v1750_v12 = vld [vmem:[%s2349_s3 + $0x40] ss:$8 sps:$4 sm:$0xff]  }
  0x66   :  { %303 = vmatprep.subr.bf16.mxu1 %v1742_v6  ;;  %v1751_v13 = vld [vmem:[%s2349_s3 + $0x34] ss:$8 sps:$4 sm:$0xff]   ;;  %v1753_v14 = vld [vmem:[%s2349_s3 + $0x30] ss:$8 sps:$4 sm:$0xff]   ;;  %v1754_v15 = vld [vmem:[%s2349_s3 + $0x24] ss:$8 sps:$4 sm:$0xff]  }
  0x67   :  { %v1756_v16 = vld [vmem:[%s2349_s3 + $0x20] ss:$8 sps:$4 sm:$0xff]   ;;  %v1757_v17 = vld [vmem:[%s2349_s3 + $0x14] ss:$8 sps:$4 sm:$0xff]   ;;  %v1759_v18 = vld [vmem:[%s2349_s3 + $0x10] ss:$8 sps:$4 sm:$0xff]  }
  0x68   :  { %1714 = vmatpush3.bf16.msra.mxu0 %v1738_v2  ;;  %v1760_v19 = vld [vmem:[%s2349_s3 + $0x4] ss:$8 sps:$4 sm:$0xff]   ;;  %v1762_v20 = vld [vmem:[%s2349_s3] ss:$8 sps:$4 sm:$0xff]   ;;  %v2157_v21 = vmov 0  }
  0x69   :  { %304 = vmatpush1.bf16.msra.mxu1 %v1744_v8  ;;  %333 = vmatprep.mubr.bf16.mxu1 %v2157_v21  ;;  %v144_v22 = vld [vmem:[%s2347_s1] sm:$0xff]  ;;  %v1765_v31 = vld [vmem:[#allocation7 + $0xe4] ss:$16 sps:$4 sm:$0xff]   ;;  %v1766_v34 = vld [vmem:[#allocation7 + $0xe8] ss:$16 sps:$4 sm:$0xff]  }
  0x6a   :  { %305 = vmatprep.subr.bf16.mxu1 %v1745_v9  ;;  %v1768_v32 = vld [vmem:[#allocation7 + $0xec] ss:$16 sps:$4 sm:$0xff]   ;;  %v1763_v33 = vld [vmem:[#allocation7 + $0xe0] ss:$16 sps:$4 sm:$0xff]   ;;  %818 = vmatprep.subr.bf16.mxu0 %v1765_v31  ;;  %v1771_v35 = vld [vmem:[#allocation7 + $0xc4] ss:$16 sps:$4 sm:$0xff]  }
  0x6b   :  { %1716 = vmatmul.mubr.msk.bf16.vlgmr.msra.gmra.mxu0 %vm157_vm1, %v139_v7  ;;  %v1774_v36 = vld [vmem:[#allocation7 + $0xcc] ss:$16 sps:$4 sm:$0xff]   ;;  %v1769_v37 = vld [vmem:[#allocation7 + $0xc0] ss:$16 sps:$4 sm:$0xff]   ;;  %v1772_v38 = vld [vmem:[#allocation7 + $0xc8] ss:$16 sps:$4 sm:$0xff]  }
  0x6c   :  { %819 = vmatpush1.bf16.msra.mxu0 %v1763_v33  ;;  %v1777_v39 = vld [vmem:[#allocation7 + $0xa4] ss:$16 sps:$4 sm:$0xff]   ;;  %v1780_v40 = vld [vmem:[#allocation7 + $0xac] ss:$16 sps:$4 sm:$0xff]   ;;  %v1775_v41 = vld [vmem:[#allocation7 + $0xa0] ss:$16 sps:$4 sm:$0xff]  }
  0x6d   :  { %306 = vmatpush1.bf16.msra.mxu1 %v1747_v10  ;;  %820 = vmatprep.subr.bf16.mxu0 %v1771_v35  ;;  %v1778_v42 = vld [vmem:[#allocation7 + $0xa8] ss:$16 sps:$4 sm:$0xff]   ;;  %v1783_v43 = vld [vmem:[#allocation7 + $0x84] ss:$16 sps:$4 sm:$0xff]   ;;  %v1786_v44 = vld [vmem:[#allocation7 + $0x8c] ss:$16 sps:$4 sm:$0xff]  }
  0x6e   :  { %307 = vmatprep.subr.bf16.mxu1 %v1748_v11  ;;  %v1781_v45 = vld [vmem:[#allocation7 + $0x80] ss:$16 sps:$4 sm:$0xff]   ;;  %v1784_v46 = vld [vmem:[#allocation7 + $0x88] ss:$16 sps:$4 sm:$0xff]   ;;  %v1789_v47 = vld [vmem:[#allocation7 + $0x64] ss:$16 sps:$4 sm:$0xff]  }
  0x6f   :  { %v1792_v48 = vld [vmem:[#allocation7 + $0x6c] ss:$16 sps:$4 sm:$0xff]   ;;  %v1787_v49 = vld [vmem:[#allocation7 + $0x60] ss:$16 sps:$4 sm:$0xff]   ;;  %v1790_v50 = vld [vmem:[#allocation7 + $0x68] ss:$16 sps:$4 sm:$0xff]  }
  0x70   :  { %821 = vmatpush1.bf16.msra.mxu0 %v1769_v37  ;;  %v1795_v51 = vld [vmem:[#allocation7 + $0x44] ss:$16 sps:$4 sm:$0xff]   ;;  %v1798_v52 = vld [vmem:[#allocation7 + $0x4c] ss:$16 sps:$4 sm:$0xff]   ;;  %v1793_v53 = vld [vmem:[#allocation7 + $0x40] ss:$16 sps:$4 sm:$0xff]  }
  0x71   :  { %308 = vmatpush1.bf16.msra.mxu1 %v1750_v12  ;;  %822 = vmatprep.subr.bf16.mxu0 %v1777_v39  ;;  %v1796_v54 = vld [vmem:[#allocation7 + $0x48] ss:$16 sps:$4 sm:$0xff]   ;;  %v1801_v55 = vld [vmem:[#allocation7 + $0x24] ss:$16 sps:$4 sm:$0xff]   ;;  %v1804_v56 = vld [vmem:[#allocation7 + $0x2c] ss:$16 sps:$4 sm:$0xff]  }
  0x72   :  { %309 = vmatprep.subr.bf16.mxu1 %v1751_v13  ;;  %v1799_v57 = vld [vmem:[#allocation7 + $0x20] ss:$16 sps:$4 sm:$0xff]   ;;  %v1802_v58 = vld [vmem:[#allocation7 + $0x28] ss:$16 sps:$4 sm:$0xff]   ;;  %v1807_v59 = vld [vmem:[#allocation7 + $0x4] ss:$16 sps:$4 sm:$0xff]  }
  0x73   :  { %v1810_v60 = vld [vmem:[#allocation7 + $0xc] ss:$16 sps:$4 sm:$0xff]   ;;  %v1805_v61 = vld [vmem:[#allocation7] ss:$16 sps:$4 sm:$0xff]   ;;  %v1808_v62 = vld [vmem:[#allocation7 + $0x8] ss:$16 sps:$4 sm:$0xff]  }
  0x74   :  { %823 = vmatpush1.bf16.msra.mxu0 %v1775_v41  ;;  %v1813_v63 = vld [vmem:[#allocation7 + $0x1e4] ss:$16 sps:$4 sm:$0xff]   ;;  %v1816_v0 = vld [vmem:[#allocation7 + $0x1ec] ss:$16 sps:$4 sm:$0xff]   ;;  %v1811_v1 = vld [vmem:[#allocation7 + $0x1e0] ss:$16 sps:$4 sm:$0xff]  }
  0x75   :  { %310 = vmatpush1.bf16.msra.mxu1 %v1753_v14  ;;  %824 = vmatprep.subr.bf16.mxu0 %v1783_v43  ;;  %v1814_v2 = vld [vmem:[#allocation7 + $0x1e8] ss:$16 sps:$4 sm:$0xff]   ;;  %v1819_v3 = vld [vmem:[#allocation7 + $0x1c4] ss:$16 sps:$4 sm:$0xff]   ;;  %v1822_v4 = vld [vmem:[#allocation7 + $0x1cc] ss:$16 sps:$4 sm:$0xff]  }
  0x76   :  { %311 = vmatprep.subr.bf16.mxu1 %v1754_v15  ;;  %v1817_v5 = vld [vmem:[#allocation7 + $0x1c0] ss:$16 sps:$4 sm:$0xff]   ;;  %v1820_v6 = vld [vmem:[#allocation7 + $0x1c8] ss:$16 sps:$4 sm:$0xff]   ;;  %v1825_v7 = vld [vmem:[#allocation7 + $0x1a4] ss:$16 sps:$4 sm:$0xff]  }
  0x77   :  { %v1828_v8 = vld [vmem:[#allocation7 + $0x1ac] ss:$16 sps:$4 sm:$0xff]   ;;  %v1823_v9 = vld [vmem:[#allocation7 + $0x1a0] ss:$16 sps:$4 sm:$0xff]   ;;  %v1826_v10 = vld [vmem:[#allocation7 + $0x1a8] ss:$16 sps:$4 sm:$0xff]  }
  0x78   :  { %825 = vmatpush1.bf16.msra.mxu0 %v1781_v45  ;;  %v1831_v11 = vld [vmem:[#allocation7 + $0x184] ss:$16 sps:$4 sm:$0xff]   ;;  %v1834_v12 = vld [vmem:[#allocation7 + $0x18c] ss:$16 sps:$4 sm:$0xff]   ;;  %v1829_v13 = vld [vmem:[#allocation7 + $0x180] ss:$16 sps:$4 sm:$0xff]  }
  0x79   :  { %312 = vmatpush1.bf16.msra.mxu1 %v1756_v16  ;;  %826 = vmatprep.subr.bf16.mxu0 %v1789_v47  ;;  %v1832_v14 = vld [vmem:[#allocation7 + $0x188] ss:$16 sps:$4 sm:$0xff]   ;;  %v1837_v15 = vld [vmem:[#allocation7 + $0x164] ss:$16 sps:$4 sm:$0xff]   ;;  %v1840_v16 = vld [vmem:[#allocation7 + $0x16c] ss:$16 sps:$4 sm:$0xff]  }
  0x7a   :  { %313 = vmatprep.subr.bf16.mxu1 %v1757_v17  ;;  %v1835_v17 = vld [vmem:[#allocation7 + $0x160] ss:$16 sps:$4 sm:$0xff]  }
  0x7b   :  { %v1841_v21 = vld [vmem:[#allocation7 + $0x140] ss:$16 sps:$4 sm:$0xff]  }
  0x7c   :  { %827 = vmatpush1.bf16.msra.mxu0 %v1787_v49 }
  0x7d   :  { %314 = vmatpush1.bf16.msra.mxu1 %v1759_v18  ;;  %828 = vmatprep.subr.bf16.mxu0 %v1795_v51  ;;  %v1838_v18 = vld [vmem:[#allocation7 + $0x168] ss:$16 sps:$4 sm:$0xff]  }
  0x7e   :  { %315 = vmatprep.subr.bf16.mxu1 %v1760_v19  ;;  %v1843_v19 = vld [vmem:[#allocation7 + $0x144] ss:$16 sps:$4 sm:$0xff]  }
  0x80   :  { %829 = vmatpush1.bf16.msra.mxu0 %v1793_v53 }
  0x81   :  { %316 = vmatpush1.bf16.msra.mxu1 %v1762_v20  ;;  %830 = vmatprep.subr.bf16.mxu0 %v1801_v55  ;;  %v1846_v20 = vld [vmem:[#allocation7 + $0x14c] ss:$16 sps:$4 sm:$0xff]  }
  0x82   :  { %859 = vmatprep.subr.bf16.mxu1 %v1768_v32 }
  0x84   :  { %831 = vmatpush1.bf16.msra.mxu0 %v1799_v57 }
  0x85   :  { %832 = vmatprep.subr.bf16.mxu0 %v1807_v59 }
  0x88   :  { %833 = vmatpush1.bf16.msra.mxu0 %v1805_v61 }
  0x89   :  { %834 = vmatprep.subr.bf16.mxu0 %v1813_v63 }
  0x8c   :  { %835 = vmatpush2.bf16.msra.mxu0 %v1811_v1 }
  0x8d   :  { %836 = vmatprep.subr.bf16.mxu0 %v1819_v3 }
  0x90   :  { %837 = vmatpush2.bf16.msra.mxu0 %v1817_v5  ;;  %v2158_v5 = vmov 1966171168  }
  0x91   :  { %838 = vmatprep.subr.bf16.mxu0 %v1825_v7  ;;  %v387_v7 = vlaneseq }
  0x94   :  { %839 = vmatpush2.bf16.msra.mxu0 %v1823_v9  ;;  %v2297_v9 = vshrl.u32 %v387_v7, 7  ;;  %v1915_v7 = vld [vmem:[#allocation12 + $0xe4] ss:$8 sps:$4 sm:$0xff]  }
  0x95   :  { %840 = vmatprep.subr.bf16.mxu0 %v1831_v11 }
  0x98   :  { %841 = vmatpush2.bf16.msra.mxu0 %v1829_v13 }
  0x99   :  { %842 = vmatprep.subr.bf16.mxu0 %v1837_v15  ;;  %v342_v15 = vld [vmem:[#allocation4] sm:$0x3] }
  0x9c   :  { %843 = vmatpush2.bf16.msra.mxu0 %v1835_v17  ;;  %v2305_v17 = vsub.s32 0, %v2297_v9 }
  0x9d   :  { %844 = vmatprep.subr.bf16.mxu0 %v1843_v19  ;;  %v343_v19 = vld [vmem:[#allocation6] sm:$0x3] }
  0xa0   :  { %845 = vmatpush2.bf16.msra.mxu0 %v1841_v21 }
 0x12b   :  { %v195_v23 = vpop.f32.mrf.mxu0 }
 0x12c   :  { %v196_v24 = vadd.f32 %v195_v23, %v144_v22  ;;  %v1844_v22 = vld [vmem:[#allocation7 + $0x148] ss:$16 sps:$4 sm:$0xff]   ;;  %v1849_v23 = vld [vmem:[#allocation7 + $0x124] ss:$16 sps:$4 sm:$0xff]  }
 0x12d   :  { %v1717_v25 = vpop.f32.mrf.mxu0  ;;  %846 = vmatprep.subr.bf16.mxu0 %v1849_v23  ;;  %v417_v23 = vrot.slane %v343_v19, %v2305_v17 }
 0x12e   :  { %vm201_vm2 = vcmp.gt.f32.partialorder %v196_v24, 0.0  ;;  %v202_v26 = vmul.f32 0.2, %v196_v24  ;;  %v1847_v25 = vld [vmem:[#allocation7 + $0x120] ss:$16 sps:$4 sm:$0xff]  }
 0x12f   :  { %v198_v27 = vpop.f32.mrf.mxu0  ;;  %847 = vmatpush2.bf16.msra.mxu0 %v1847_v25 }
 0x130   :  { %v203_v28 = vsel %vm201_vm2, %v196_v24, %v202_v26  ;;  %v1852_v24 = vld [vmem:[#allocation7 + $0x12c] ss:$16 sps:$4 sm:$0xff]   ;;  %v1850_v26 = vld [vmem:[#allocation7 + $0x128] ss:$16 sps:$4 sm:$0xff]   ;;  %v1855_v27 = vld [vmem:[#allocation7 + $0x104] ss:$16 sps:$4 sm:$0xff]  }
 0x131   :  { %v1718_v29 = vpop.f32.mrf.mxu0  ;;  %v204_v30 = vpack.c.bf16 %v203_v28, %v203_v28  ;;  %v1853_v28 = vld [vmem:[#allocation7 + $0x100] ss:$16 sps:$4 sm:$0xff]   ;;  %848 = vmatprep.subr.bf16.mxu0 %v1855_v27 }
 0x132   :  { %v1856_v29 = vld [vmem:[#allocation7 + $0x108] ss:$16 sps:$4 sm:$0xff]  }
 0x133   :  { %334 = vmatmul.mubr.bf16.vlgmr.msra.gmra.mxu1 %v204_v30  ;;  %v1858_v30 = vld [vmem:[#allocation7 + $0x10c] ss:$16 sps:$4 sm:$0xff]   ;;  %849 = vmatpush2.bf16.msra.mxu0 %v1853_v28 }
 0x134   :  { %860 = vmatpush1.bf16.msra.mxu1 %v1766_v34 }
 0x135   :  { %861 = vmatprep.subr.bf16.mxu1 %v1774_v36 }
 0x138   :  { %862 = vmatpush1.bf16.msra.mxu1 %v1772_v38 }
 0x139   :  { %863 = vmatprep.subr.bf16.mxu1 %v1780_v40 }
 0x13c   :  { %864 = vmatpush1.bf16.msra.mxu1 %v1778_v42 }
 0x13d   :  { %865 = vmatprep.subr.bf16.mxu1 %v1786_v44 }
 0x140   :  { %866 = vmatpush1.bf16.msra.mxu1 %v1784_v46 }
 0x141   :  { %867 = vmatprep.subr.bf16.mxu1 %v1792_v48 }
 0x144   :  { %868 = vmatpush1.bf16.msra.mxu1 %v1790_v50 }
 0x145   :  { %869 = vmatprep.subr.bf16.mxu1 %v1798_v52 }
 0x148   :  { %870 = vmatpush1.bf16.msra.mxu1 %v1796_v54 }
 0x149   :  { %871 = vmatprep.subr.bf16.mxu1 %v1804_v56 }
 0x14c   :  { %872 = vmatpush1.bf16.msra.mxu1 %v1802_v58 }
 0x14d   :  { %873 = vmatprep.subr.bf16.mxu1 %v1810_v60 }
 0x150   :  { %874 = vmatpush1.bf16.msra.mxu1 %v1808_v62 }
 0x151   :  { %875 = vmatprep.subr.bf16.mxu1 %v1816_v0 }
 0x154   :  { %876 = vmatpush2.bf16.msra.mxu1 %v1814_v2 }
 0x155   :  { %877 = vmatprep.subr.bf16.mxu1 %v1822_v4 }
 0x158   :  { %878 = vmatpush2.bf16.msra.mxu1 %v1820_v6  ;;  %v385_v6 = vunpack.c.l.s4 %v2158_v5  ;;  %v1907_v5 = vld [vmem:[#allocation12 + $0xf0] ss:$8 sps:$4 sm:$0xff]  }
 0x159   :  { %879 = vmatprep.subr.bf16.mxu1 %v1828_v8 }
 0x15a   :  { %v386_v8 = vunpack.c.0.s8 %v385_v6  ;;  %v1910_v6 = vld [vmem:[#allocation12 + $0x1f0] ss:$8 sps:$4 sm:$0xff]  }
 0x15c   :  { %880 = vmatpush2.bf16.msra.mxu1 %v1826_v10  ;;  %v2300_v11 = vsub.s32 %v386_v8, %v2297_v9  ;;  %v1918_v8 = vld [vmem:[#allocation12 + $0x1e4] ss:$8 sps:$4 sm:$0xff]  }
 0x15d   :  { %881 = vmatprep.subr.bf16.mxu1 %v1834_v12 }
 0x160   :  { %882 = vmatpush2.bf16.msra.mxu1 %v1832_v14 }
 0x161   :  { %883 = vmatprep.subr.bf16.mxu1 %v1840_v16 }
 0x164   :  { %884 = vmatpush2.bf16.msra.mxu1 %v1838_v18  ;;  %v2308_v18 = vsub.s32 1, %v2297_v9 }
 0x165   :  { %885 = vmatprep.subr.bf16.mxu1 %v1846_v20 }
 0x168   :  { %886 = vmatpush2.bf16.msra.mxu1 %v1844_v22 }
 0x169   :  { %887 = vmatprep.subr.bf16.mxu1 %v1852_v24  ;;  %v421_v24 = vrot.slane %v343_v19, %v2308_v18  ;;  %v1927_v19 = vld [vmem:[#allocation12 + $0xc4] ss:$8 sps:$4 sm:$0xff]  }
 0x16c   :  { %888 = vmatpush2.bf16.msra.mxu1 %v1850_v26 }
 0x16d   :  { %889 = vmatprep.subr.bf16.mxu1 %v1858_v30 }
 0x170   :  { %890 = vmatpush2.bf16.msra.mxu1 %v1856_v29 }
 0x1f3   :  { %v335_v31 = vpop.f32.mrf.mxu1 }
 0x1f4   :  { %v344_v32 = vrot.slane %v335_v31, 4 }
 0x1f5   :  { %v337_v33 = vpop.f32.mrf.mxu1 }
 0x1f6   :  { %v345_v34 = vadd.f32 %v344_v32, %v335_v31  ;;  %v350_v35 = vrot.slane %v337_v33, 4 }
 0x1f7   :  { %v339_v36 = vpop.f32.mrf.mxu1 }
 0x1f8   :  { %v346_v37 = vrot.slane %v345_v34, 2  ;;  %v351_v38 = vadd.f32 %v350_v35, %v337_v33  ;;  %v1861_v35 = vld [vmem:[#allocation12 + $0x74] ss:$8 sps:$4 sm:$0xff]  }
 0x1f9   :  { %v340_v39 = vpop.f32.mrf.mxu1  ;;  %v1864_v36 = vld [vmem:[#allocation12 + $0x174] ss:$8 sps:$4 sm:$0xff]   ;;  %1466 = vmatprep.subr.bf16.mxu0 %v1861_v35  ;;  %v1951_v35 = vld [vmem:[#allocation12 + $0x84] ss:$8 sps:$4 sm:$0xff]  }
 0x1fa   :  { %v347_v40 = vadd.f32 %v346_v37, %v345_v34  ;;  %v352_v41 = vrot.slane %v351_v38, 2  ;;  %v1859_v37 = vld [vmem:[#allocation12 + $0x70] ss:$8 sps:$4 sm:$0xff]   ;;  %1507 = vmatprep.subr.bf16.mxu1 %v1864_v36  ;;  %v1867_v39 = vld [vmem:[#allocation12 + $0x64] ss:$8 sps:$4 sm:$0xff]  }
 0x1fb   :  { %v1949_v36 = vld [vmem:[#allocation12 + $0x80] ss:$8 sps:$4 sm:$0xff]  }
 0x1fc   :  { %v348_v42 = vrot.slane %v347_v40, 1  ;;  %v353_v43 = vadd.f32 %v352_v41, %v351_v38  ;;  %v1862_v38 = vld [vmem:[#allocation12 + $0x170] ss:$8 sps:$4 sm:$0xff]   ;;  %v1865_v41 = vld [vmem:[#allocation12 + $0x60] ss:$8 sps:$4 sm:$0xff]  }
 0x1fe   :  { %v349_v44 = vadd.f32 %v348_v42, %v347_v40  ;;  %v354_v45 = vrot.slane %v353_v43, 1  ;;  %v1870_v40 = vld [vmem:[#allocation12 + $0x164] ss:$8 sps:$4 sm:$0xff]   ;;  %v1868_v42 = vld [vmem:[#allocation12 + $0x160] ss:$8 sps:$4 sm:$0xff]  }
 0x200   :  { %v357_v46 = vmul.f32 0.125, %v349_v44  ;;  %v355_v47 = vadd.f32 %v354_v45, %v353_v43  ;;  %v1873_v43 = vld [vmem:[#allocation12 + $0x54] ss:$8 sps:$4 sm:$0xff]   ;;  %v1871_v45 = vld [vmem:[#allocation12 + $0x50] ss:$8 sps:$4 sm:$0xff]  }
 0x201   :  { %v1876_v44 = vld [vmem:[#allocation12 + $0x154] ss:$8 sps:$4 sm:$0xff]  }
 0x202   :  { %v359_v48 = vsub.f32 %v335_v31, %v357_v46  ;;  %v358_v49 = vmul.f32 0.125, %v355_v47  ;;  %v1874_v46 = vld [vmem:[#allocation12 + $0x150] ss:$8 sps:$4 sm:$0xff]   ;;  %v1879_v47 = vld [vmem:[#allocation12 + $0x44] ss:$8 sps:$4 sm:$0xff]  }
 0x204   :  { %v361_v50 = vmul.f32 %v359_v48, %v359_v48  ;;  %v360_v51 = vsub.f32 %v337_v33, %v358_v49  ;;  %v1877_v49 = vld [vmem:[#allocation12 + $0x40] ss:$8 sps:$4 sm:$0xff]  }
 0x206   :  { %v363_v52 = vrot.slane %v361_v50, 4  ;;  %v362_v53 = vmul.f32 %v360_v51, %v360_v51 }
 0x208   :  { %v364_v54 = vadd.f32 %v363_v52, %v361_v50  ;;  %v369_v55 = vrot.slane %v362_v53, 4  ;;  %v1880_v50 = vld [vmem:[#allocation12 + $0x140] ss:$8 sps:$4 sm:$0xff]   ;;  %v1888_v52 = vld [vmem:[#allocation12 + $0x134] ss:$8 sps:$4 sm:$0xff]  }
 0x20a   :  { %v365_v56 = vrot.slane %v364_v54, 2  ;;  %v370_v57 = vadd.f32 %v369_v55, %v362_v53  ;;  %v1883_v53 = vld [vmem:[#allocation12 + $0x30] ss:$8 sps:$4 sm:$0xff]   ;;  %v1891_v55 = vld [vmem:[#allocation12 + $0x24] ss:$8 sps:$4 sm:$0xff]  }
 0x20c   :  { %v366_v58 = vadd.f32 %v365_v56, %v364_v54  ;;  %v371_v59 = vrot.slane %v370_v57, 2  ;;  %v1886_v54 = vld [vmem:[#allocation12 + $0x130] ss:$8 sps:$4 sm:$0xff]   ;;  %v1894_v56 = vld [vmem:[#allocation12 + $0x124] ss:$8 sps:$4 sm:$0xff]  }
 0x20e   :  { %v367_v60 = vrot.slane %v366_v58, 1  ;;  %v372_v61 = vadd.f32 %v371_v59, %v370_v57  ;;  %v1889_v57 = vld [vmem:[#allocation12 + $0x20] ss:$8 sps:$4 sm:$0xff]   ;;  %v1897_v59 = vld [vmem:[#allocation12 + $0x14] ss:$8 sps:$4 sm:$0xff]  }
 0x210   :  { %v368_v62 = vadd.f32 %v367_v60, %v366_v58  ;;  %v373_v63 = vrot.slane %v372_v61, 1  ;;  %v1892_v58 = vld [vmem:[#allocation12 + $0x120] ss:$8 sps:$4 sm:$0xff]   ;;  %v1900_v60 = vld [vmem:[#allocation12 + $0x114] ss:$8 sps:$4 sm:$0xff]  }
 0x212   :  { %v375_v0 = vmul.f32 0.125, %v368_v62  ;;  %v374_v1 = vadd.f32 %v373_v63, %v372_v61  ;;  %v1895_v61 = vld [vmem:[#allocation12 + $0x10] ss:$8 sps:$4 sm:$0xff]   ;;  %v1903_v63 = vld [vmem:[#allocation12 + $0x4] ss:$8 sps:$4 sm:$0xff]  }
 0x213   :  { %v1898_v62 = vld [vmem:[#allocation12 + $0x110] ss:$8 sps:$4 sm:$0xff]  }
 0x214   :  { %v377_v2 = vadd.f32 0.8, %v375_v0  ;;  %v376_v3 = vmul.f32 0.125, %v374_v1  ;;  %v1906_v0 = vld [vmem:[#allocation12 + $0x104] ss:$8 sps:$4 sm:$0xff]  }
 0x215   :  { %v1901_v1 = vld [vmem:[#allocation12] ss:$8 sps:$4 sm:$0xff]  }
 0x216   :  { %v378_v4 = vadd.f32 0.8, %v376_v3  ;;  %1955 = vrsqrt.f32 %v377_v2  ;;  %v1904_v2 = vld [vmem:[#allocation12 + $0x100] ss:$8 sps:$4 sm:$0xff]   ;;  %v1909_v3 = vld [vmem:[#allocation12 + $0xf4] ss:$8 sps:$4 sm:$0xff]  }
 0x218   :  { %1957 = vrsqrt.f32 %v378_v4  ;;  %v1912_v4 = vld [vmem:[#allocation12 + $0x1f4] ss:$8 sps:$4 sm:$0xff]  }
 0x223   :  { %v1956_v10 = vpop.eup %1955 }
 0x225   :  { %v1958_v12 = vpop.eup %1957 }
 0x226   :  { %v383_v13 = vcombine.low %v1956_v10, %v1958_v12  ;;  %v1913_v10 = vld [vmem:[#allocation12 + $0xe0] ss:$8 sps:$4 sm:$0xff]  }
 0x227   :  { %v1916_v12 = vld [vmem:[#allocation12 + $0x1e0] ss:$8 sps:$4 sm:$0xff]  }
 0x228   :  { %v390_v14 = vrot.slane %v383_v13, %v2300_v11  ;;  %v1921_v13 = vld [vmem:[#allocation12 + $0xd4] ss:$8 sps:$4 sm:$0xff]  }
 0x22a   :  { %v397_v16 = vrot.slane %v390_v14, %v2300_v11  ;;  %v1924_v14 = vld [vmem:[#allocation12 + $0x1d4] ss:$8 sps:$4 sm:$0xff]  }
 0x22c   :  { %v399_v20 = vmul.f32 %v397_v16, %v342_v15  ;;  %v1919_v15 = vld [vmem:[#allocation12 + $0xd0] ss:$8 sps:$4 sm:$0xff]  }
 0x22d   :  { %v1922_v16 = vld [vmem:[#allocation12 + $0x1d0] ss:$8 sps:$4 sm:$0xff]  }
 0x22e   :  { %v404_v21 = vrot.slane %v399_v20, %v2305_v17  ;;  %v408_v22 = vrot.slane %v399_v20, %v2308_v18  ;;  %v1930_v20 = vld [vmem:[#allocation12 + $0x1c4] ss:$8 sps:$4 sm:$0xff]  }
 0x230   :  { %v411_v25 = vmul.f32 %v404_v21, %v359_v48  ;;  %v412_v26 = vmul.f32 %v408_v22, %v360_v51  ;;  %v1882_v48 = vld [vmem:[#allocation12 + $0x144] ss:$8 sps:$4 sm:$0xff]   ;;  %v1885_v51 = vld [vmem:[#allocation12 + $0x34] ss:$8 sps:$4 sm:$0xff]   ;;  %v1925_v21 = vld [vmem:[#allocation12 + $0xc0] ss:$8 sps:$4 sm:$0xff]  }
 0x231   :  { %v1928_v22 = vld [vmem:[#allocation12 + $0x1c0] ss:$8 sps:$4 sm:$0xff]  }
 0x232   :  { %v425_v27 = vadd.f32 %v421_v24, %v412_v26  ;;  %v424_v28 = vadd.f32 %v417_v23, %v411_v25  ;;  %v1933_v23 = vld [vmem:[#allocation12 + $0xb4] ss:$8 sps:$4 sm:$0xff]   ;;  %v1931_v25 = vld [vmem:[#allocation12 + $0xb0] ss:$8 sps:$4 sm:$0xff]  }
 0x233   :  { %v1936_v24 = vld [vmem:[#allocation12 + $0x1b4] ss:$8 sps:$4 sm:$0xff]   ;;  %v1934_v26 = vld [vmem:[#allocation12 + $0x1b0] ss:$8 sps:$4 sm:$0xff]  }
 0x234   :  { %vm427_vm3 = vcmp.gt.f32.partialorder %v425_v27, 0.0  ;;  %v429_v29 = vmul.f32 0.2, %v425_v27  ;;  %vm426_vm4 = vcmp.gt.f32.partialorder %v424_v28, 0.0  ;;  %v428_v30 = vmul.f32 0.2, %v424_v28 }
 0x236   :  { %v431_v31 = vsel %vm427_vm3, %v425_v27, %v429_v29  ;;  %v430_v32 = vsel %vm426_vm4, %v424_v28, %v428_v30  ;;  %v1939_v27 = vld [vmem:[#allocation12 + $0xa4] ss:$8 sps:$4 sm:$0xff]   ;;  %v1937_v29 = vld [vmem:[#allocation12 + $0xa0] ss:$8 sps:$4 sm:$0xff]  }
 0x237   :  { %v433_v33 = vpack.c.bf16 %v431_v31, %v431_v31  ;;  %v432_v34 = vpack.c.bf16 %v430_v32, %v430_v32  ;;  %v1942_v28 = vld [vmem:[#allocation12 + $0x1a4] ss:$8 sps:$4 sm:$0xff]   ;;  %v1940_v30 = vld [vmem:[#allocation12 + $0x1a0] ss:$8 sps:$4 sm:$0xff]   ;;  %v1945_v31 = vld [vmem:[#allocation12 + $0x94] ss:$8 sps:$4 sm:$0xff]  }
 0x238   :  { %v1948_v32 = vld [vmem:[#allocation12 + $0x194] ss:$8 sps:$4 sm:$0xff]  }
 0x239   :  { %850 = vmatprep.mubr.bf16.mxu0 %v433_v33  ;;  %891 = vmatprep.mubr.bf16.mxu1 %v433_v33  ;;  %v1943_v33 = vld [vmem:[#allocation12 + $0x90] ss:$8 sps:$4 sm:$0xff]  }
 0x23a   :  { %851 = vmatmul.mubr.bf16.vlgmr.msra.gmra.mxu0 %v432_v34  ;;  %892 = vmatmul.mubr.bf16.vlgmr.msra.gmra.mxu1 %v432_v34  ;;  %v1946_v34 = vld [vmem:[#allocation12 + $0x190] ss:$8 sps:$4 sm:$0xff]  }
 0x23b   :  { %1467 = vmatpush1.bf16.msra.mxu0 %v1859_v37  ;;  %1508 = vmatpush1.bf16.msra.mxu1 %v1862_v38  ;;  %v1954_v37 = vld [vmem:[#allocation12 + $0x184] ss:$8 sps:$4 sm:$0xff]   ;;  %v1952_v38 = vld [vmem:[#allocation12 + $0x180] ss:$8 sps:$4 sm:$0xff]  }
 0x23c   :  { %1468 = vmatprep.subr.bf16.mxu0 %v1867_v39  ;;  %1509 = vmatprep.subr.bf16.mxu1 %v1870_v40 }
 0x23f   :  { %1469 = vmatpush1.bf16.msra.mxu0 %v1865_v41  ;;  %1510 = vmatpush1.bf16.msra.mxu1 %v1868_v42 }
 0x240   :  { %1470 = vmatprep.subr.bf16.mxu0 %v1873_v43  ;;  %1511 = vmatprep.subr.bf16.mxu1 %v1876_v44 }
 0x243   :  { %1471 = vmatpush1.bf16.msra.mxu0 %v1871_v45  ;;  %1512 = vmatpush1.bf16.msra.mxu1 %v1874_v46 }
 0x244   :  { %1472 = vmatprep.subr.bf16.mxu0 %v1879_v47  ;;  %1513 = vmatprep.subr.bf16.mxu1 %v1882_v48 }
 0x247   :  { %1473 = vmatpush1.bf16.msra.mxu0 %v1877_v49  ;;  %1514 = vmatpush1.bf16.msra.mxu1 %v1880_v50 }
 0x248   :  { %1474 = vmatprep.subr.bf16.mxu0 %v1885_v51  ;;  %1515 = vmatprep.subr.bf16.mxu1 %v1888_v52 }
 0x24b   :  { %1475 = vmatpush1.bf16.msra.mxu0 %v1883_v53  ;;  %1516 = vmatpush1.bf16.msra.mxu1 %v1886_v54 }
 0x24c   :  { %1476 = vmatprep.subr.bf16.mxu0 %v1891_v55  ;;  %1517 = vmatprep.subr.bf16.mxu1 %v1894_v56 }
 0x24f   :  { %1477 = vmatpush1.bf16.msra.mxu0 %v1889_v57  ;;  %1518 = vmatpush1.bf16.msra.mxu1 %v1892_v58 }
 0x250   :  { %1478 = vmatprep.subr.bf16.mxu0 %v1897_v59  ;;  %1519 = vmatprep.subr.bf16.mxu1 %v1900_v60 }
 0x253   :  { %1479 = vmatpush1.bf16.msra.mxu0 %v1895_v61  ;;  %1520 = vmatpush1.bf16.msra.mxu1 %v1898_v62 }
 0x254   :  { %1480 = vmatprep.subr.bf16.mxu0 %v1903_v63  ;;  %1521 = vmatprep.subr.bf16.mxu1 %v1906_v0 }
 0x257   :  { %1481 = vmatpush1.bf16.msra.mxu0 %v1901_v1  ;;  %1522 = vmatpush1.bf16.msra.mxu1 %v1904_v2 }
 0x258   :  { %1482 = vmatprep.subr.bf16.mxu0 %v1909_v3  ;;  %1523 = vmatprep.subr.bf16.mxu1 %v1912_v4 }
 0x25b   :  { %1483 = vmatpush2.bf16.msra.mxu0 %v1907_v5  ;;  %1524 = vmatpush2.bf16.msra.mxu1 %v1910_v6 }
 0x25c   :  { %1484 = vmatprep.subr.bf16.mxu0 %v1915_v7  ;;  %1525 = vmatprep.subr.bf16.mxu1 %v1918_v8 }
 0x25f   :  { %1485 = vmatpush2.bf16.msra.mxu0 %v1913_v10  ;;  %1526 = vmatpush2.bf16.msra.mxu1 %v1916_v12 }
 0x260   :  { %1486 = vmatprep.subr.bf16.mxu0 %v1921_v13  ;;  %1527 = vmatprep.subr.bf16.mxu1 %v1924_v14 }
 0x263   :  { %1487 = vmatpush2.bf16.msra.mxu0 %v1919_v15  ;;  %1528 = vmatpush2.bf16.msra.mxu1 %v1922_v16 }
 0x264   :  { %1488 = vmatprep.subr.bf16.mxu0 %v1927_v19  ;;  %1529 = vmatprep.subr.bf16.mxu1 %v1930_v20 }
 0x267   :  { %1489 = vmatpush2.bf16.msra.mxu0 %v1925_v21  ;;  %1530 = vmatpush2.bf16.msra.mxu1 %v1928_v22 }
 0x268   :  { %1490 = vmatprep.subr.bf16.mxu0 %v1933_v23  ;;  %1531 = vmatprep.subr.bf16.mxu1 %v1936_v24 }
 0x26b   :  { %1491 = vmatpush2.bf16.msra.mxu0 %v1931_v25  ;;  %1532 = vmatpush2.bf16.msra.mxu1 %v1934_v26 }
 0x26c   :  { %1492 = vmatprep.subr.bf16.mxu0 %v1939_v27  ;;  %1533 = vmatprep.subr.bf16.mxu1 %v1942_v28 }
 0x26f   :  { %1493 = vmatpush2.bf16.msra.mxu0 %v1937_v29  ;;  %1534 = vmatpush2.bf16.msra.mxu1 %v1940_v30 }
 0x270   :  { %1494 = vmatprep.subr.bf16.mxu0 %v1945_v31  ;;  %1535 = vmatprep.subr.bf16.mxu1 %v1948_v32 }
 0x273   :  { %1495 = vmatpush2.bf16.msra.mxu0 %v1943_v33  ;;  %1536 = vmatpush2.bf16.msra.mxu1 %v1946_v34 }
 0x274   :  { %1496 = vmatprep.subr.bf16.mxu0 %v1951_v35  ;;  %1537 = vmatprep.subr.bf16.mxu1 %v1954_v37 }
 0x277   :  { %1497 = vmatpush2.bf16.msra.mxu0 %v1949_v36  ;;  %1538 = vmatpush2.bf16.msra.mxu1 %v1952_v38 }
 0x2fa   :  { %v852_v39 = vpop.f32.mrf.mxu0  ;;  %v893_v40 = vpop.f32.mrf.mxu1 }
 0x2fb   :  { %v902_v41 = vrot.slane %v852_v39, 4  ;;  %v914_v42 = vrot.slane %v893_v40, 4 }
 0x2fc   :  { %v854_v43 = vpop.f32.mrf.mxu0  ;;  %v895_v44 = vpop.f32.mrf.mxu1 }
 0x2fd   :  { %v903_v45 = vadd.f32 %v902_v41, %v852_v39  ;;  %v915_v46 = vadd.f32 %v914_v42, %v893_v40  ;;  %v908_v47 = vrot.slane %v854_v43, 4  ;;  %v920_v48 = vrot.slane %v895_v44, 4 }
 0x2fe   :  { %v856_v49 = vpop.f32.mrf.mxu0  ;;  %v897_v50 = vpop.f32.mrf.mxu1 }
 0x2ff   :  { %v904_v51 = vrot.slane %v903_v45, 2  ;;  %v916_v52 = vrot.slane %v915_v46, 2  ;;  %v909_v53 = vadd.f32 %v908_v47, %v854_v43  ;;  %v921_v54 = vadd.f32 %v920_v48, %v895_v44 }
 0x300   :  { %v857_v55 = vpop.f32.mrf.mxu0  ;;  %v898_v56 = vpop.f32.mrf.mxu1 }
 0x301   :  { %v905_v57 = vadd.f32 %v904_v51, %v903_v45  ;;  %v917_v58 = vadd.f32 %v916_v52, %v915_v46  ;;  %v910_v59 = vrot.slane %v909_v53, 2  ;;  %v922_v60 = vrot.slane %v921_v54, 2 }
 0x303   :  { %v906_v61 = vrot.slane %v905_v57, 1  ;;  %v918_v62 = vrot.slane %v917_v58, 1  ;;  %v911_v63 = vadd.f32 %v910_v59, %v909_v53  ;;  %v923_v0 = vadd.f32 %v922_v60, %v921_v54 }
 0x305   :  { %v907_v1 = vadd.f32 %v906_v61, %v905_v57  ;;  %v919_v2 = vadd.f32 %v918_v62, %v917_v58  ;;  %v912_v3 = vrot.slane %v911_v63, 1  ;;  %v924_v4 = vrot.slane %v923_v0, 1 }
 0x307   :  { %v926_v5 = vmul.f32 0.125, %v907_v1  ;;  %v928_v6 = vmul.f32 0.125, %v919_v2  ;;  %v913_v7 = vadd.f32 %v912_v3, %v911_v63  ;;  %v925_v8 = vadd.f32 %v924_v4, %v923_v0  ;;  %v900_v0 = vld [vmem:[#allocation9] sm:$0xf]  ;;  %v901_v1 = vld [vmem:[#allocation10] sm:$0xf] }
 0x308   :  { %v1019_v3 = vsub.s32 3, %v2297_v9  ;;  %v1015_v4 = vsub.s32 2, %v2297_v9 }
 0x309   :  { %v2314_v10 = vsub.f32 %v852_v39, %v926_v5  ;;  %v2316_v12 = vsub.f32 %v893_v40, %v928_v6  ;;  %v927_v13 = vmul.f32 0.125, %v913_v7  ;;  %v929_v14 = vmul.f32 0.125, %v925_v8 }
 0x30a   :  { %v1045_v6 = vrot.slane %v901_v1, %v1019_v3  ;;  %v1037_v7 = vrot.slane %v901_v1, %v2308_v18  ;;  %v1033_v8 = vrot.slane %v901_v1, %v2305_v17 }
 0x30b   :  { %v934_v15 = vmul.f32 %v2314_v10, %v2314_v10  ;;  %v936_v16 = vmul.f32 %v2316_v12, %v2316_v12  ;;  %v2322_v19 = vsub.f32 %v854_v43, %v927_v13  ;;  %v933_v20 = vsub.f32 %v895_v44, %v929_v14 }
 0x30c   :  { %v1041_v13 = vrot.slane %v901_v1, %v1015_v4 }
 0x30d   :  { %v938_v21 = vrot.slane %v934_v15, 4  ;;  %v950_v22 = vrot.slane %v936_v16, 4  ;;  %v935_v23 = vmul.f32 %v2322_v19, %v2322_v19  ;;  %v937_v24 = vmul.f32 %v933_v20, %v933_v20 }
 0x30f   :  { %v939_v25 = vadd.f32 %v938_v21, %v934_v15  ;;  %v951_v26 = vadd.f32 %v950_v22, %v936_v16  ;;  %v944_v27 = vrot.slane %v935_v23, 4  ;;  %v956_v28 = vrot.slane %v937_v24, 4 }
 0x311   :  { %v940_v29 = vrot.slane %v939_v25, 2  ;;  %v952_v30 = vrot.slane %v951_v26, 2  ;;  %v945_v31 = vadd.f32 %v944_v27, %v935_v23  ;;  %v957_v32 = vadd.f32 %v956_v28, %v937_v24 }
 0x313   :  { %v941_v33 = vadd.f32 %v940_v29, %v939_v25  ;;  %v953_v34 = vadd.f32 %v952_v30, %v951_v26  ;;  %v946_v35 = vrot.slane %v945_v31, 2  ;;  %v958_v36 = vrot.slane %v957_v32, 2 }
 0x315   :  { %v942_v37 = vrot.slane %v941_v33, 1  ;;  %v954_v38 = vrot.slane %v953_v34, 1  ;;  %v947_v39 = vadd.f32 %v946_v35, %v945_v31  ;;  %v959_v40 = vadd.f32 %v958_v36, %v957_v32  ;;  %v1134_v36 = vld [vmem:[#allocation13] sm:$0x3] }
 0x317   :  { %v943_v41 = vadd.f32 %v942_v37, %v941_v33  ;;  %v955_v42 = vadd.f32 %v954_v38, %v953_v34  ;;  %v948_v43 = vrot.slane %v947_v39, 1  ;;  %v960_v44 = vrot.slane %v959_v40, 1 }
 0x318   :  { %v1139_v37 = vrot.slane %v1134_v36, %v2305_v17  ;;  %v1143_v38 = vrot.slane %v1134_v36, %v2308_v18 }
 0x319   :  { %v962_v45 = vmul.f32 0.125, %v943_v41  ;;  %v964_v46 = vmul.f32 0.125, %v955_v42  ;;  %v949_v47 = vadd.f32 %v948_v43, %v947_v39  ;;  %v961_v48 = vadd.f32 %v960_v44, %v959_v40 }
 0x31b   :  { %v966_v49 = vadd.f32 0.8, %v962_v45  ;;  %v968_v50 = vadd.f32 0.8, %v964_v46  ;;  %v963_v51 = vmul.f32 0.125, %v949_v47  ;;  %v965_v52 = vmul.f32 0.125, %v961_v48 }
 0x31d   :  { %1959 = vrsqrt.f32 %v966_v49  ;;  %v967_v53 = vadd.f32 0.8, %v963_v51  ;;  %v969_v54 = vadd.f32 0.8, %v965_v52 }
 0x31e   :  { %1961 = vrsqrt.f32 %v968_v50 }
 0x31f   :  { %1963 = vrsqrt.f32 %v967_v53 }
 0x320   :  { %1965 = vrsqrt.f32 %v969_v54 }
 0x32a   :  { %v1960_v55 = vpop.eup %1959 }
 0x32b   :  { %v1962_v56 = vpop.eup %1961 }
 0x32c   :  { %v1964_v57 = vpop.eup %1963 }
 0x32d   :  { %v1966_v58 = vpop.eup %1965  ;;  %v978_v59 = vcombine.low %v1960_v55, %v1964_v57 }
 0x32e   :  { %v979_v60 = vcombine.low %v1962_v56, %v1966_v58 }
 0x32f   :  { %v986_v61 = vrot.slane %v978_v59, %v2300_v11 }
 0x330   :  { %v993_v62 = vrot.slane %v979_v60, %v2300_v11 }
 0x332   :  { %v994_v63 = vcombine.low %v986_v61, %v993_v62 }
 0x334   :  { %v1001_v2 = vrot.slane %v994_v63, %v2300_v11 }
 0x336   :  { %v1003_v5 = vmul.f32 %v1001_v2, %v900_v0 }
 0x338   :  { %v1020_v14 = vrot.slane %v1003_v5, %v1019_v3  ;;  %v1012_v15 = vrot.slane %v1003_v5, %v2308_v18  ;;  %v1008_v16 = vrot.slane %v1003_v5, %v2305_v17  ;;  %v1016_v21 = vrot.slane %v1003_v5, %v1015_v4 }
 0x33a   :  { %v1028_v22 = vmul.f32 %v1020_v14, %v933_v20  ;;  %v1026_v11 = vmul.f32 %v1012_v15, %v2322_v19  ;;  %v1025_v23 = vmul.f32 %v1008_v16, %v2314_v10  ;;  %v1027_v9 = vmul.f32 %v1016_v21, %v2316_v12 }
 0x33c   :  { %v1053_v24 = vadd.f32 %v1045_v6, %v1028_v22  ;;  %v1051_v25 = vadd.f32 %v1037_v7, %v1026_v11  ;;  %v1050_v26 = vadd.f32 %v1033_v8, %v1025_v23  ;;  %v1052_v27 = vadd.f32 %v1041_v13, %v1027_v9 }
 0x33e   :  { %vm1055_vm5 = vcmp.gt.f32.partialorder %v1051_v25, 0.0  ;;  %v1059_v28 = vmul.f32 0.2, %v1051_v25  ;;  %vm1057_vm6 = vcmp.gt.f32.partialorder %v1053_v24, 0.0  ;;  %v1061_v29 = vmul.f32 0.2, %v1053_v24 }
 0x33f   :  { %vm1054_vm7 = vcmp.gt.f32.partialorder %v1050_v26, 0.0  ;;  %v1058_v30 = vmul.f32 0.2, %v1050_v26  ;;  %vm1056_vm8 = vcmp.gt.f32.partialorder %v1052_v27, 0.0  ;;  %v1060_v31 = vmul.f32 0.2, %v1052_v27 }
 0x340   :  { %v1063_v32 = vsel %vm1055_vm5, %v1051_v25, %v1059_v28  ;;  %v1065_v20 = vsel %vm1057_vm6, %v1053_v24, %v1061_v29 }
 0x341   :  { %v1067_v33 = vpack.c.bf16 %v1063_v32, %v1063_v32  ;;  %v1069_v19 = vpack.c.bf16 %v1065_v20, %v1065_v20  ;;  %v1062_v34 = vsel %vm1054_vm7, %v1050_v26, %v1058_v30  ;;  %v1064_v10 = vsel %vm1056_vm8, %v1052_v27, %v1060_v31 }
 0x342   :  { %v1066_v35 = vpack.c.bf16 %v1062_v34, %v1062_v34  ;;  %v1068_v12 = vpack.c.bf16 %v1064_v10, %v1064_v10 }
 0x343   :  { %1498 = vmatprep.mubr.bf16.mxu0 %v1067_v33  ;;  %1539 = vmatprep.mubr.bf16.mxu1 %v1069_v19 }
 0x344   :  { %1499 = vmatmul.mubr.bf16.vlgmr.msra.gmra.mxu0 %v1066_v35  ;;  %1540 = vmatmul.mubr.bf16.vlgmr.msra.gmra.mxu1 %v1068_v12 }
 0x404   :  { %v1500_v39 = vpop.f32.mrf.mxu0  ;;  %v1541_v40 = vpop.f32.mrf.mxu1 }
 0x405   :  { %v1501_v41 = vadd.f32 %v1500_v39, %v1139_v37 }
 0x406   :  { %v1502_v42 = vpop.f32.mrf.mxu0  ;;  %v1543_v43 = vpop.f32.mrf.mxu1 }
 0x407   :  { %v1542_v44 = vadd.f32 %v1541_v40, %v1501_v41  ;;  %v1503_v45 = vadd.f32 %v1502_v42, %v1143_v38 }
 0x408   :  { %v1504_v46 = vpop.f32.mrf.mxu0  ;;  %v1545_v47 = vpop.f32.mrf.mxu1 }
 0x409   :  { %1967 = vtanh.f32 %v1542_v44  ;;  %v1544_v48 = vadd.f32 %v1543_v43, %v1503_v45 }
 0x40a   :  { %v1505_v49 = vpop.f32.mrf.mxu0  ;;  %v1546_v50 = vpop.f32.mrf.mxu1 }
 0x40b   :  { %1969 = vtanh.f32 %v1544_v48 }
 0x416   :  { %v1968_v51 = vpop.eup %1967 }
 0x417   :  { %1550 = vst [vmem:[%s2357_s11] sm:$0xff] %v1968_v51 }
 0x418   :  { %v1970_v17 = vpop.eup %1969 }
 0x419   :  { %1551 = vst [vmem:[%s2357_s11 + $0x8] sm:$0xff] %v1970_v17 }
 0x41a   :  { %1556 = vsyncpa [#allocation3], 1 }
 0x41b   :  { %1557 = vsyncpa [#allocation5], 1 }
 0x41c   :  { %1558 = vsyncpa [#allocation8], 1 }
 0x41d   :  { %1559 = vsyncpa [#allocation11], 1 }
 0x41e   :  { %1560 = vsyncpa [#allocation14], 1 }

</bundles_post_ra>
